<compile_context>
chip_gen: v7x
topology: tpu7x:2x2x1
jax: 0.10.0
libtpu: 0.0.40
codegen_flags: <defaults>
</compile_context>

<pallas_src>
import functools

import numpy as np
import jax
import jax.numpy as jnp
from jax.experimental import pallas as pl
from jax.experimental.pallas import tpu as pltpu

NEG_SLOPE = 0.2      # LeakyReLU(0.2), as in the PyTorch module
LANE = 128           # vreg lane width
SUBLANE = 8          # vreg sublane count (f32)
VMEM_BUDGET = 44 << 20   # conservative tile budget so it fits v7x's 64 MiB/TC


def _round_up(v, m):
    return int(-(-int(v) // m) * m)


# ---------------------------------------------------------------------------
# Pallas kernel: full 4-layer MLP forward on one (TB, D) batch tile.
# ---------------------------------------------------------------------------
def _mlp_kernel(compute_dtype):
    def kernel(x_ref, w_ref, b_ref, o_ref):
        h = x_ref[...]                                        # (TB, D) f32
        for layer in range(4):
            # MXU matmul, f32 accumulation. Weights may be bf16 (v6e/v7x win);
            # zero-padded rows/lanes contribute exact zeros, so padding is exact.
            h = jnp.dot(h.astype(compute_dtype), w_ref[layer],
                        preferred_element_type=jnp.float32)
            h = h + b_ref[layer:layer + 1, :]                 # (1, D) broadcast
            if layer < 3:
                h = jnp.maximum(h, NEG_SLOPE * h)             # LeakyReLU(0.2)
        o_ref[...] = h                                        # lane-dense store
    return kernel


# ---------------------------------------------------------------------------
# One-time parameter packing (hoisted out of the per-call forward).
# ---------------------------------------------------------------------------
def pack_params(params, nin, *, weight_dtype=jnp.float32):
    """params: list of 4 (W (in,out), b (out,)).  Returns (w_slab, b_slab, nout)."""
    dims_in = [int(W.shape[0]) for W, _ in params]
    dims_out = [int(W.shape[1]) for W, _ in params]
    nout = dims_out[-1]
    # Common padded feature width, rounded up to the 128-lane width.
    D = _round_up(max([int(nin)] + dims_in + dims_out), LANE)

    w_slab = jnp.stack([
        jnp.zeros((D, D), weight_dtype).at[:W.shape[0], :W.shape[1]].set(
            W.astype(weight_dtype))
        for W, _ in params])                                  # (4, D, D)
    b_slab = jnp.stack([
        jnp.zeros((D,), jnp.float32).at[:b.size].set(
            b.astype(jnp.float32).reshape(-1))
        for _, b in params])                                  # (4, D) f32
    return w_slab, b_slab, nout


# ---------------------------------------------------------------------------
# Jitted forward: pad x, run the fused kernel over a batch grid, slice back.
# ---------------------------------------------------------------------------
@functools.partial(jax.jit, static_argnames=("nout", "block_b"))
def _mlp_forward_impl(x, w_slab, b_slab, *, nout, block_b):
    B, nin = x.shape
    D = int(w_slab.shape[1])
    wbytes = jnp.dtype(w_slab.dtype).itemsize

    # Batch tile: as large as block_b (amortizes ~0.35us/grid-step), multiple
    # of 8 sublanes, shrunk if the double-buffered footprint exceeds budget.
    TB = min(int(block_b), _round_up(B, SUBLANE))
    TB = max(SUBLANE, _round_up(TB, SUBLANE))

    def footprint(tb):
        x_bytes = tb * D * 4          # x tile
        o_bytes = tb * D * 4          # output tile (lane-dense, D wide)
        w_bytes = 4 * D * D * wbytes  # weight slab
        bias_bytes = 4 * D * 4
        return 2 * (x_bytes + o_bytes + w_bytes + bias_bytes)  # double-buffered

    while footprint(TB) > VMEM_BUDGET and TB > SUBLANE:
        TB = max(SUBLANE, _round_up(TB // 2, SUBLANE))

    B_pad = _round_up(B, TB)
    x_pad = jnp.zeros((B_pad, D), jnp.float32).at[:B, :nin].set(
        x.astype(jnp.float32))

    vmem_limit = int(min(max(2 * footprint(TB), 32 << 20), 64 << 20))

    out = pl.pallas_call(
        _mlp_kernel(w_slab.dtype),
        out_shape=jax.ShapeDtypeStruct((B_pad, D), jnp.float32),
        grid_spec=pltpu.PrefetchScalarGridSpec(
            num_scalar_prefetch=0,
            grid=(B_pad // TB,),
            in_specs=[
                pl.BlockSpec((TB, D), lambda i: (i, 0)),        # x tile (pipelined)
                pl.BlockSpec((4, D, D), lambda i: (0, 0, 0)),   # weights (VMEM-resident)
                pl.BlockSpec((4, D), lambda i: (0, 0)),         # biases  (VMEM-resident)
            ],
            out_specs=pl.BlockSpec((TB, D), lambda i: (i, 0)),  # lane-dense output
        ),
        compiler_params=pltpu.CompilerParams(
            dimension_semantics=("parallel",),                  # shard batch on v7x
            vmem_limit_bytes=vmem_limit),
    )(x_pad, w_slab, b_slab)

    # Host-side slicing back to the logical shape (free layout plumbing).
    return out[:B, :nout]


def mlp_forward(x, packed, *, block_b=2048):
    w_slab, b_slab, nout = packed
    return _mlp_forward_impl(x, w_slab, b_slab, nout=nout, block_b=block_b)


# ---------------------------------------------------------------------------
# Pure-JAX reference for correctness check.
# ---------------------------------------------------------------------------
def mlp_reference(x, params):
    h = x
    for i, (W, b) in enumerate(params):
        h = jnp.dot(h, W, precision=jax.lax.Precision.HIGHEST) + b.reshape(1, -1)
        if i < 3:
            h = jnp.where(h >= 0.0, h, NEG_SLOPE * h)
    return h


if __name__ == "__main__":
    # MLP(nin=8, nout=16, nh=32), batch=6 (exercises batch padding).
    nin, nout, nh = 8, 16, 32
    layer_dims = [(nin, nh), (nh, nh), (nh, nh), (nh, nout)]

    # Deterministic synthetic parameters (PyTorch Linear-style uniform init).
    key = jax.random.PRNGKey(0)
    params = []
    for (fi, fo) in layer_dims:
        key, kw, kb = jax.random.split(key, 3)
        bound = 1.0 / np.sqrt(fi)
        W = jax.random.uniform(kw, (fi, fo), jnp.float32, -bound, bound)
        b = jax.random.uniform(kb, (fo,), jnp.float32, -bound, bound)
        params.append((W, b))

    key, kx = jax.random.split(key)
    x = jax.random.normal(kx, (6, nin), jnp.float32)

    y_ref = mlp_reference(x, params)

    # f32 weights: numerical-parity path.
    packed_f32 = pack_params(params, nin, weight_dtype=jnp.float32)
    y = mlp_forward(x, packed_f32)
    jax.block_until_ready(y)
    np.testing.assert_allclose(np.asarray(y), np.asarray(y_ref),
                               rtol=1e-5, atol=1e-5)

    # bf16 weights: halves weight DMA/VMEM, full-rate MXU on v6e/v7x.
    packed_bf16 = pack_params(params, nin, weight_dtype=jnp.bfloat16)
    y_bf16 = mlp_forward(x, packed_bf16)
    jax.block_until_ready(y_bf16)
    np.testing.assert_allclose(np.asarray(y_bf16), np.asarray(y_ref),
                               rtol=5e-2, atol=5e-2)

    print("KERNEL_OK")
</pallas_src>

<mosaic_0001>
module attributes {stable_mosaic.version = 11 : i64} {
  func.func @kernel(%arg0: i32, %arg1: memref<8x128xf32, #tpu.memory_space<vmem>>, %arg2: memref<4x128x128xf32, #tpu.memory_space<vmem>>, %arg3: memref<4x128xf32, #tpu.memory_space<vmem>>, %arg4: memref<8x128xf32, #tpu.memory_space<vmem>>) attributes {dimension_semantics = [#tpu.dimension_semantics<parallel>], iteration_bounds = array<i64: 1>, scalar_prefetch = 0 : i64, scratch_operands = 0 : i64, tpu.core_type = #tpu.core_type<tc>, window_params = [{transform_indices = @transform_0, window_bounds = array<i64: 8, 128>}, {pipeline_mode = #tpu.pipeline_mode<synchronous>, transform_indices = @transform_1, window_bounds = array<i64: 4, 128, 128>}, {pipeline_mode = #tpu.pipeline_mode<synchronous>, transform_indices = @transform_2, window_bounds = array<i64: 4, 128>}, {transform_indices = @transform_3, window_bounds = array<i64: 8, 128>}]} {
    %c0 = arith.constant 0 : index
    %c0_0 = arith.constant 0 : index
    %0 = vector.load %arg1[%c0, %c0_0] : memref<8x128xf32, #tpu.memory_space<vmem>>, vector<8x128xf32>
    %c0_1 = arith.constant 0 : index
    %c0_2 = arith.constant 0 : index
    %c0_3 = arith.constant 0 : index
    %1 = vector.load %arg2[%c0_1, %c0_2, %c0_3] : memref<4x128x128xf32, #tpu.memory_space<vmem>>, vector<1x128x128xf32>
    %2 = vector.shape_cast %1 : vector<1x128x128xf32> to vector<128x128xf32>
    %cst = arith.constant dense<0.000000e+00> : vector<8x128xf32>
    %3 = tpu.matmul %0, %2, %cst {dimension_numbers = #tpu.dot_dimension_numbers<[1], [0], [0], [1], [0, 0, 1, 1], [], []>} : vector<8x128xf32>, vector<128x128xf32>, vector<8x128xf32> -> vector<8x128xf32>
    %c0_4 = arith.constant 0 : index
    %c0_5 = arith.constant 0 : index
    %4 = vector.load %arg3[%c0_4, %c0_5] : memref<4x128xf32, #tpu.memory_space<vmem>>, vector<1x128xf32>
    %5 = vector.broadcast %4 : vector<1x128xf32> to vector<8x128xf32>
    %6 = arith.addf %3, %5 : vector<8x128xf32>
    %cst_6 = arith.constant 2.000000e-01 : f32
    %7 = vector.broadcast %cst_6 : f32 to vector<8x128xf32>
    %8 = arith.mulf %7, %6 : vector<8x128xf32>
    %9 = arith.maximumf %6, %8 : vector<8x128xf32>
    %c1 = arith.constant 1 : index
    %c0_7 = arith.constant 0 : index
    %c0_8 = arith.constant 0 : index
    %10 = vector.load %arg2[%c1, %c0_7, %c0_8] : memref<4x128x128xf32, #tpu.memory_space<vmem>>, vector<1x128x128xf32>
    %11 = vector.shape_cast %10 : vector<1x128x128xf32> to vector<128x128xf32>
    %cst_9 = arith.constant dense<0.000000e+00> : vector<8x128xf32>
    %12 = tpu.matmul %9, %11, %cst_9 {dimension_numbers = #tpu.dot_dimension_numbers<[1], [0], [0], [1], [0, 0, 1, 1], [], []>} : vector<8x128xf32>, vector<128x128xf32>, vector<8x128xf32> -> vector<8x128xf32>
    %c1_10 = arith.constant 1 : index
    %c0_11 = arith.constant 0 : index
    %13 = vector.load %arg3[%c1_10, %c0_11] : memref<4x128xf32, #tpu.memory_space<vmem>>, vector<1x128xf32>
    %14 = vector.broadcast %13 : vector<1x128xf32> to vector<8x128xf32>
    %15 = arith.addf %12, %14 : vector<8x128xf32>
    %cst_12 = arith.constant 2.000000e-01 : f32
    %16 = vector.broadcast %cst_12 : f32 to vector<8x128xf32>
    %17 = arith.mulf %16, %15 : vector<8x128xf32>
    %18 = arith.maximumf %15, %17 : vector<8x128xf32>
    %c2 = arith.constant 2 : index
    %c0_13 = arith.constant 0 : index
    %c0_14 = arith.constant 0 : index
    %19 = vector.load %arg2[%c2, %c0_13, %c0_14] : memref<4x128x128xf32, #tpu.memory_space<vmem>>, vector<1x128x128xf32>
    %20 = vector.shape_cast %19 : vector<1x128x128xf32> to vector<128x128xf32>
    %cst_15 = arith.constant dense<0.000000e+00> : vector<8x128xf32>
    %21 = tpu.matmul %18, %20, %cst_15 {dimension_numbers = #tpu.dot_dimension_numbers<[1], [0], [0], [1], [0, 0, 1, 1], [], []>} : vector<8x128xf32>, vector<128x128xf32>, vector<8x128xf32> -> vector<8x128xf32>
    %c2_16 = arith.constant 2 : index
    %c0_17 = arith.constant 0 : index
    %22 = vector.load %arg3[%c2_16, %c0_17] : memref<4x128xf32, #tpu.memory_space<vmem>>, vector<1x128xf32>
    %23 = vector.broadcast %22 : vector<1x128xf32> to vector<8x128xf32>
    %24 = arith.addf %21, %23 : vector<8x128xf32>
    %cst_18 = arith.constant 2.000000e-01 : f32
    %25 = vector.broadcast %cst_18 : f32 to vector<8x128xf32>
    %26 = arith.mulf %25, %24 : vector<8x128xf32>
    %27 = arith.maximumf %24, %26 : vector<8x128xf32>
    %c3 = arith.constant 3 : index
    %c0_19 = arith.constant 0 : index
    %c0_20 = arith.constant 0 : index
    %28 = vector.load %arg2[%c3, %c0_19, %c0_20] : memref<4x128x128xf32, #tpu.memory_space<vmem>>, vector<1x128x128xf32>
    %29 = vector.shape_cast %28 : vector<1x128x128xf32> to vector<128x128xf32>
    %cst_21 = arith.constant dense<0.000000e+00> : vector<8x128xf32>
    %30 = tpu.matmul %27, %29, %cst_21 {dimension_numbers = #tpu.dot_dimension_numbers<[1], [0], [0], [1], [0, 0, 1, 1], [], []>} : vector<8x128xf32>, vector<128x128xf32>, vector<8x128xf32> -> vector<8x128xf32>
    %c3_22 = arith.constant 3 : index
    %c0_23 = arith.constant 0 : index
    %31 = vector.load %arg3[%c3_22, %c0_23] : memref<4x128xf32, #tpu.memory_space<vmem>>, vector<1x128xf32>
    %32 = vector.broadcast %31 : vector<1x128xf32> to vector<8x128xf32>
    %33 = arith.addf %30, %32 : vector<8x128xf32>
    %c0_24 = arith.constant 0 : index
    %c0_25 = arith.constant 0 : index
    %34 = vector.load %arg4[%c0_24, %c0_25] : memref<8x128xf32, #tpu.memory_space<vmem>>, vector<8x128xf32>
    tpu.vector_store %arg4[%c0_24, %c0_25], %33 {strides = array<i32>} : memref<8x128xf32, #tpu.memory_space<vmem>>, vector<8x128xf32>,
    return
  }
  func.func @transform_0(%arg0: i32) -> (i32, i32) {
    %c0_i32 = arith.constant 0 : i32
    %c0_i32_0 = arith.constant 0 : i32
    return %arg0, %c0_i32 : i32, i32
  }
  func.func @transform_1(%arg0: i32) -> (i32, i32, i32) {
    %c0_i32 = arith.constant 0 : i32
    %c0_i32_0 = arith.constant 0 : i32
    %c0_i32_1 = arith.constant 0 : i32
    %c0_i32_2 = arith.constant 0 : i32
    return %c0_i32, %c0_i32_0, %c0_i32_1 : i32, i32, i32
  }
  func.func @transform_2(%arg0: i32) -> (i32, i32) {
    %c0_i32 = arith.constant 0 : i32
    %c0_i32_0 = arith.constant 0 : i32
    %c0_i32_1 = arith.constant 0 : i32
    return %c0_i32, %c0_i32_0 : i32, i32
  }
  func.func @transform_3(%arg0: i32) -> (i32, i32) {
    %c0_i32 = arith.constant 0 : i32
    %c0_i32_0 = arith.constant 0 : i32
    return %arg0, %c0_i32 : i32, i32
  }
}

</mosaic_0001>

<bundles_post_ra>
// kernel: _mlp_forward_impl.1
= control target key start
LH: loop header
LB: loop body
LE: loop exit
PB: predicated region body
PF: predicated region fallthrough
CT: control target
= control target key end

     0   :  { %8 = vsyncpa [#allocation3], 0  ;;  %s888_s0 = inlined_call_operand.vmem [shape: f32[8,128], index: 0, kind: input, shape index: {}]   ;;  %s889_s1 = inlined_call_operand.hbm [shape: f32[4,128,128], index: 1, kind: input, shape index: {}]   ;;  %s890_s2 = inlined_call_operand.vmem [shape: f32[4,128], index: 2, kind: input, shape index: {}]   ;;  %s891_s3 = inlined_call_operand.hbm [shape: f32[8,128], index: 3, kind: output, shape index: {}]  }
   0x1   :  { %9 = vsyncpa [#allocation4], 0  ;;  %s782_s12 = smov [#allocation2]   ;;  %s734_s16 = scalar_lea.hbm %s889_s1, 8192 }
   0x2   :  { %s17_s13 = sshll.u32 %s782_s12, 4  ;;  %p735_p0 = scmp.ne.s32.totalorder %s889_s1, %s734_s16  ;;  %s18_s13 = int_to_ptr.vmem [resolvable:$true] %s17_s13 }
   0x3   :  { %p738_p1 = scmp.lt.u32.totalorder %s734_s16, %s889_s1 }
   0x5   :  { %p740_p2 = pnand %p738_p1, %p735_p0 }
   0x7   :  { %743 = shalt.err (!%p740_p2)
}
   0x8   :  { %s744_s21 = scalar_lea.vmem %s18_s13, 8192  ;;  %p749_p4 = scmp.lt.s32.totalorder %s18_s13, %s18_s13 }
   0x9   :  { %p745_p3 = scmp.ne.s32.totalorder %s18_s13, %s744_s21  ;;  %p750_p5 = scmp.lt.s32.totalorder %s744_s21, %s744_s21 }
   0xb   :  { %p751_p6 = por %p750_p5, %p749_p4 }
   0xd   :  { %p752_p7 = pnand %p751_p6, %p745_p3 }
   0xf   :  { %755 = shalt.err (!%p752_p7)
}
  0x10   :  { %s783_s22 = smov 128   ;;  %s784_s23 = smov 8  }
  0x11   :  { %23 = dma.hbm_to_vmem [thread:$0]  %s889_s1, 8192, %s18_s13, [#allocation3], %s783_s22, %s783_s22, %s784_s23  }
  0x12   :  { %778 = dma.done.wait [#allocation3], 8192  }
  0x13   :  { %779 = vsyncadd [#allocation3], 4294959104  ;;  %v785_v0 = vmov 0.0|0.0   ;;  %vm786_vm0 = vmmov 0   ;;  %v787_v1 = vmov 0.0   ;;  %v30_v2 = vld [vmem:[#allocation2] sm:$0xff] }
  0x14   :  { %631 = vmatprep.subr.bf16.mxu0 %v785_v0  ;;  %523 = vmatprep.mubr.msk.f32.mxu0 %vm786_vm0, %v787_v1  ;;  %v31_v3 = vld [vmem:[#allocation2 + $0x8] sm:$0xff]  ;;  %v32_v4 = vld [vmem:[#allocation2 + $0x10] sm:$0xff]  ;;  %v33_v6 = vld [vmem:[#allocation2 + $0x18] sm:$0xff]  ;;  %s788_s7 = smov [#allocation5]  }
  0x15   :  { %655 = vmatprep.subr.bf16.mxu1 %v785_v0  ;;  %558 = vmatprep.mubr.msk.f32.mxu1 %vm786_vm0, %v787_v1  ;;  %v632_v5 = vpack.c.bf16 %v31_v3, %v30_v2  ;;  %v635_v7 = vpack.c.bf16 %v33_v6, %v32_v4  ;;  %v34_v8 = vld [vmem:[#allocation2 + $0x20] sm:$0xff]  ;;  %v35_v9 = vld [vmem:[#allocation2 + $0x28] sm:$0xff]  ;;  %v126_v12 = vld [vmem:[#allocation2 + $0x90] sm:$0xff]  ;;  %s410_s8 = sshll.u32 %s788_s7, 4  ;;  %s411_s8 = int_to_ptr.vmem [resolvable:$true] %s410_s8 }
  0x16   :  { %v124_v10 = vld [vmem:[#allocation2 + $0x80] sm:$0xff]  ;;  %v125_v11 = vld [vmem:[#allocation2 + $0x88] sm:$0xff]  ;;  %v127_v13 = vld [vmem:[#allocation2 + $0x98] sm:$0xff]  ;;  %v638_v14 = vpack.c.bf16 %v35_v9, %v34_v8  ;;  %s756_s9 = scalar_lea.vmem %s411_s8, 128  ;;  %p761_p9 = scmp.lt.s32.totalorder %s411_s8, %s411_s8 }
  0x17   :  { %633 = vmatpush3.bf16.msra.mxu0 %v632_v5  ;;  %v656_v15 = vpack.c.bf16 %v125_v11, %v124_v10  ;;  %v36_v16 = vld [vmem:[#allocation2 + $0x30] sm:$0xff]  ;;  %v37_v17 = vld [vmem:[#allocation2 + $0x38] sm:$0xff]  ;;  %v659_v18 = vpack.c.bf16 %v127_v13, %v126_v12  ;;  %v128_v19 = vld [vmem:[#allocation2 + $0xa0] sm:$0xff]  ;;  %p757_p8 = scmp.ne.s32.totalorder %s411_s8, %s756_s9  ;;  %p762_p10 = scmp.lt.s32.totalorder %s756_s9, %s756_s9 }
  0x18   :  { %634 = vmatprep.subr.bf16.mxu0 %v785_v0  ;;  %v129_v20 = vld [vmem:[#allocation2 + $0xa8] sm:$0xff]  ;;  %v641_v21 = vpack.c.bf16 %v37_v17, %v36_v16  ;;  %v38_v22 = vld [vmem:[#allocation2 + $0x40] sm:$0xff]  ;;  %v130_v25 = vld [vmem:[#allocation2 + $0xb0] sm:$0xff] }
  0x19   :  { %657 = vmatpush3.bf16.msra.mxu1 %v656_v15  ;;  %v39_v23 = vld [vmem:[#allocation2 + $0x48] sm:$0xff]  ;;  %v662_v24 = vpack.c.bf16 %v129_v20, %v128_v19  ;;  %v131_v26 = vld [vmem:[#allocation2 + $0xb8] sm:$0xff]  ;;  %v40_v28 = vld [vmem:[#allocation2 + $0x50] sm:$0xff]  ;;  %p763_p11 = por %p762_p10, %p761_p9 }
  0x1a   :  { %658 = vmatprep.subr.bf16.mxu1 %v785_v0  ;;  %v644_v27 = vpack.c.bf16 %v39_v23, %v38_v22  ;;  %v41_v29 = vld [vmem:[#allocation2 + $0x58] sm:$0xff]  ;;  %v665_v30 = vpack.c.bf16 %v131_v26, %v130_v25  ;;  %v132_v31 = vld [vmem:[#allocation2 + $0xc0] sm:$0xff]  ;;  %v133_v32 = vld [vmem:[#allocation2 + $0xc8] sm:$0xff] }
  0x1b   :  { %636 = vmatpush3.bf16.msra.mxu0 %v635_v7  ;;  %v647_v33 = vpack.c.bf16 %v41_v29, %v40_v28  ;;  %v42_v34 = vld [vmem:[#allocation2 + $0x60] sm:$0xff]  ;;  %v43_v35 = vld [vmem:[#allocation2 + $0x68] sm:$0xff]  ;;  %v668_v36 = vpack.c.bf16 %v133_v32, %v132_v31  ;;  %v134_v37 = vld [vmem:[#allocation2 + $0xd0] sm:$0xff]  ;;  %p764_p12 = pnand %p763_p11, %p757_p8 }
  0x1c   :  { %637 = vmatprep.subr.bf16.mxu0 %v785_v0  ;;  %v135_v38 = vld [vmem:[#allocation2 + $0xd8] sm:$0xff]  ;;  %v650_v39 = vpack.c.bf16 %v43_v35, %v42_v34  ;;  %v44_v40 = vld [vmem:[#allocation2 + $0x70] sm:$0xff]  ;;  %v136_v45 = vld [vmem:[#allocation2 + $0xe0] sm:$0xff] }
  0x1d   :  { %660 = vmatpush3.bf16.msra.mxu1 %v659_v18  ;;  %v45_v41 = vld [vmem:[#allocation2 + $0x78] sm:$0xff]  ;;  %v671_v42 = vpack.c.bf16 %v135_v38, %v134_v37  ;;  %v137_v46 = vld [vmem:[#allocation2 + $0xe8] sm:$0xff]  ;;  %v138_v48 = vld [vmem:[#allocation2 + $0xf0] sm:$0xff] }
  0x1e   :  { %661 = vmatprep.subr.bf16.mxu1 %v785_v0  ;;  %v653_v43 = vpack.c.bf16 %v45_v41, %v44_v40  ;;  %v29_v44 = vld [vmem:[%s888_s0] sm:$0xff]  ;;  %v674_v47 = vpack.c.bf16 %v137_v46, %v136_v45  ;;  %v218_v51 = vld [vmem:[#allocation2 + $0x100] sm:$0xff]  ;;  %v219_v52 = vld [vmem:[#allocation2 + $0x108] sm:$0xff] }
  0x1f   :  { %639 = vmatpush3.bf16.msra.mxu0 %v638_v14  ;;  %v139_v49 = vld [vmem:[#allocation2 + $0xf8] sm:$0xff]  ;;  %v220_v53 = vld [vmem:[#allocation2 + $0x110] sm:$0xff]  ;;  %v680_v54 = vpack.c.bf16 %v219_v52, %v218_v51  ;;  %v222_v57 = vld [vmem:[#allocation2 + $0x120] sm:$0xff] }
  0x20   :  { %640 = vmatprep.subr.bf16.mxu0 %v785_v0  ;;  %v677_v50 = vpack.c.bf16 %v139_v49, %v138_v48  ;;  %v221_v55 = vld [vmem:[#allocation2 + $0x118] sm:$0xff]  ;;  %v223_v58 = vld [vmem:[#allocation2 + $0x128] sm:$0xff]  ;;  %v224_v60 = vld [vmem:[#allocation2 + $0x130] sm:$0xff] }
  0x21   :  { %663 = vmatpush3.bf16.msra.mxu1 %v662_v24  ;;  %v683_v56 = vpack.c.bf16 %v221_v55, %v220_v53  ;;  %v686_v59 = vpack.c.bf16 %v223_v58, %v222_v57  ;;  %v225_v61 = vld [vmem:[#allocation2 + $0x138] sm:$0xff]  ;;  %v226_v63 = vld [vmem:[#allocation2 + $0x140] sm:$0xff]  ;;  %v227_v2 = vld [vmem:[#allocation2 + $0x148] sm:$0xff] }
  0x22   :  { %664 = vmatprep.subr.bf16.mxu1 %v785_v0  ;;  %v689_v62 = vpack.c.bf16 %v225_v61, %v224_v60  ;;  %v692_v3 = vpack.c.bf16 %v227_v2, %v226_v63  ;;  %v228_v4 = vld [vmem:[#allocation2 + $0x150] sm:$0xff]  ;;  %v229_v5 = vld [vmem:[#allocation2 + $0x158] sm:$0xff]  ;;  %v230_v13 = vld [vmem:[#allocation2 + $0x160] sm:$0xff] }
  0x23   :  { %642 = vmatpush3.bf16.msra.mxu0 %v641_v21  ;;  %v695_v6 = vpack.c.bf16 %v229_v5, %v228_v4  ;;  %v419_v7 = vld [vmem:[%s890_s2] ss:$0 sm:$0xff]  ;;  %v231_v14 = vld [vmem:[#allocation2 + $0x168] sm:$0xff]  ;;  %v232_v16 = vld [vmem:[#allocation2 + $0x170] sm:$0xff] }
  0x24   :  { %643 = vmatprep.subr.bf16.mxu0 %v785_v0  ;;  %v698_v15 = vpack.c.bf16 %v231_v14, %v230_v13  ;;  %v233_v17 = vld [vmem:[#allocation2 + $0x178] sm:$0xff]  ;;  %v312_v19 = vld [vmem:[#allocation2 + $0x180] sm:$0xff]  ;;  %v313_v20 = vld [vmem:[#allocation2 + $0x188] sm:$0xff] }
  0x25   :  { %666 = vmatpush3.bf16.msra.mxu1 %v665_v30  ;;  %v701_v18 = vpack.c.bf16 %v233_v17, %v232_v16  ;;  %v314_v21 = vld [vmem:[#allocation2 + $0x190] sm:$0xff]  ;;  %v704_v22 = vpack.c.bf16 %v313_v20, %v312_v19  ;;  %v315_v23 = vld [vmem:[#allocation2 + $0x198] sm:$0xff]  ;;  %v317_v25 = vld [vmem:[#allocation2 + $0x1a8] sm:$0xff] }
  0x26   :  { %667 = vmatprep.subr.bf16.mxu1 %v785_v0  ;;  %v707_v24 = vpack.c.bf16 %v315_v23, %v314_v21  ;;  %v319_v28 = vld [vmem:[#allocation2 + $0x1b8] sm:$0xff]  ;;  %v320_v30 = vld [vmem:[#allocation2 + $0x1c0] sm:$0xff]  ;;  %v321_v31 = vld [vmem:[#allocation2 + $0x1c8] sm:$0xff] }
  0x27   :  { %645 = vmatpush3.bf16.msra.mxu0 %v644_v27  ;;  %v318_v27 = vld [vmem:[#allocation2 + $0x1b0] sm:$0xff]  ;;  %v716_v32 = vpack.c.bf16 %v321_v31, %v320_v30  ;;  %v323_v34 = vld [vmem:[#allocation2 + $0x1d8] sm:$0xff] }
  0x28   :  { %646 = vmatprep.subr.bf16.mxu0 %v785_v0  ;;  %v713_v29 = vpack.c.bf16 %v319_v28, %v318_v27  ;;  %v326_v45 = vld [vmem:[#allocation2 + $0x1f0] sm:$0xff]  ;;  %v327_v46 = vld [vmem:[#allocation2 + $0x1f8] sm:$0xff] }
  0x29   :  { %669 = vmatpush3.bf16.msra.mxu1 %v668_v36  ;;  %v420_v36 = vld [vmem:[%s890_s2 + $0x1] ss:$0 sm:$0xff]  ;;  %v421_v48 = vld [vmem:[%s890_s2 + $0x2] ss:$0 sm:$0xff] }
  0x2a   :  { %670 = vmatprep.subr.bf16.mxu1 %v785_v0 }
  0x2b   :  { %648 = vmatpush3.bf16.msra.mxu0 %v647_v33  ;;  %v322_v33 = vld [vmem:[#allocation2 + $0x1d0] sm:$0xff] }
  0x2c   :  { %649 = vmatprep.subr.bf16.mxu0 %v785_v0  ;;  %v719_v35 = vpack.c.bf16 %v323_v34, %v322_v33 }
  0x2d   :  { %672 = vmatpush3.bf16.msra.mxu1 %v671_v42  ;;  %v324_v42 = vld [vmem:[#allocation2 + $0x1e0] sm:$0xff] }
  0x2e   :  { %673 = vmatprep.subr.bf16.mxu1 %v785_v0 }
  0x2f   :  { %651 = vmatpush3.bf16.msra.mxu0 %v650_v39 }
  0x30   :  { %652 = vmatprep.subr.bf16.mxu0 %v785_v0 }
  0x31   :  { %675 = vmatpush3.bf16.msra.mxu1 %v674_v47  ;;  %v725_v47 = vpack.c.bf16 %v327_v46, %v326_v45 }
  0x32   :  { %676 = vmatprep.subr.bf16.mxu1 %v785_v0 }
  0x33   :  { %654 = vmatpush3.bf16.msra.mxu0 %v653_v43  ;;  %v325_v43 = vld [vmem:[#allocation2 + $0x1e8] sm:$0xff] }
  0x34   :  { %679 = vmatprep.subr.bf16.mxu0 %v785_v0 }
  0x35   :  { %678 = vmatpush3.bf16.msra.mxu1 %v677_v50 }
  0x36   :  { %524 = vmatmul.mubr.f32.vlgmr.msra.gmra.mrb[0].mxu0 %v29_v44  ;;  %703 = vmatprep.subr.bf16.mxu1 %v785_v0  ;;  %v722_v44 = vpack.c.bf16 %v325_v43, %v324_v42 }
  0x37   :  { %593 = vmatprep.mubr.msk.f32.mxu0 %vm786_vm0, %v787_v1  ;;  %681 = vmatpush3.bf16.msra.mxu0 %v680_v54  ;;  %v422_v54 = vld [vmem:[%s890_s2 + $0x3] ss:$0 sm:$0xff] }
  0x38   :  { %682 = vmatprep.subr.bf16.mxu0 %v785_v0 }
  0x3b   :  { %684 = vmatpush3.bf16.msra.mxu0 %v683_v56 }
  0x3c   :  { %685 = vmatprep.subr.bf16.mxu0 %v785_v0 }
  0x3f   :  { %687 = vmatpush3.bf16.msra.mxu0 %v686_v59 }
  0x40   :  { %688 = vmatprep.subr.bf16.mxu0 %v785_v0 }
  0x43   :  { %690 = vmatpush3.bf16.msra.mxu0 %v689_v62 }
  0x44   :  { %691 = vmatprep.subr.bf16.mxu0 %v785_v0 }
  0x47   :  { %693 = vmatpush3.bf16.msra.mxu0 %v692_v3 }
  0x48   :  { %694 = vmatprep.subr.bf16.mxu0 %v785_v0 }
  0x4b   :  { %696 = vmatpush3.bf16.msra.mxu0 %v695_v6 }
  0x4c   :  { %697 = vmatprep.subr.bf16.mxu0 %v785_v0 }
  0x4f   :  { %699 = vmatpush3.bf16.msra.mxu0 %v698_v15 }
  0x50   :  { %700 = vmatprep.subr.bf16.mxu0 %v785_v0 }
  0x53   :  { %702 = vmatpush3.bf16.msra.mxu0 %v701_v18 }
 0x109   :  { %v117_v8 = vpop.f32.mrb[0].mxu0 }
 0x10a   :  { %v118_v9 = vadd.f32 %v419_v7, %v117_v8  ;;  %v525_v10 = vpop.f32.mrb[1].mxu0 }
 0x10c   :  { %v121_v11 = vmul.f32 0.2, %v118_v9 }
 0x10e   :  { %v122_v12 = vmax.f32 %v118_v9, %v121_v11 }
 0x110   :  { %559 = vmatmul.mubr.f32.vlgmr.msra.gmra.mrb[0].mxu1 %v122_v12 }
 0x111   :  { %628 = vmatprep.mubr.msk.f32.mxu1 %vm786_vm0, %v787_v1  ;;  %705 = vmatpush3.bf16.msra.mxu1 %v704_v22  ;;  %v316_v1 = vld [vmem:[#allocation2 + $0x1a0] sm:$0xff] }
 0x112   :  { %706 = vmatprep.subr.bf16.mxu1 %v785_v0  ;;  %v710_v26 = vpack.c.bf16 %v317_v25, %v316_v1 }
 0x115   :  { %708 = vmatpush3.bf16.msra.mxu1 %v707_v24 }
 0x116   :  { %709 = vmatprep.subr.bf16.mxu1 %v785_v0 }
 0x119   :  { %711 = vmatpush3.bf16.msra.mxu1 %v710_v26 }
 0x11a   :  { %712 = vmatprep.subr.bf16.mxu1 %v785_v0 }
 0x11d   :  { %714 = vmatpush3.bf16.msra.mxu1 %v713_v29 }
 0x11e   :  { %715 = vmatprep.subr.bf16.mxu1 %v785_v0 }
 0x121   :  { %717 = vmatpush3.bf16.msra.mxu1 %v716_v32 }
 0x122   :  { %718 = vmatprep.subr.bf16.mxu1 %v785_v0 }
 0x125   :  { %720 = vmatpush3.bf16.msra.mxu1 %v719_v35 }
 0x126   :  { %721 = vmatprep.subr.bf16.mxu1 %v785_v0 }
 0x129   :  { %723 = vmatpush3.bf16.msra.mxu1 %v722_v44 }
 0x12a   :  { %724 = vmatprep.subr.bf16.mxu1 %v785_v0 }
 0x12d   :  { %726 = vmatpush3.bf16.msra.mxu1 %v725_v47 }
 0x1e3   :  { %v211_v37 = vpop.f32.mrb[0].mxu1 }
 0x1e4   :  { %v212_v38 = vadd.f32 %v420_v36, %v211_v37  ;;  %v560_v39 = vpop.f32.mrb[1].mxu1 }
 0x1e6   :  { %v215_v40 = vmul.f32 0.2, %v212_v38 }
 0x1e8   :  { %v216_v41 = vmax.f32 %v212_v38, %v215_v40 }
 0x1ea   :  { %594 = vmatmul.mubr.f32.vlgmr.msra.gmra.mrb[2].mxu0 %v216_v41 }
 0x2bd   :  { %v305_v49 = vpop.f32.mrb[2].mxu0 }
 0x2be   :  { %v306_v50 = vadd.f32 %v421_v48, %v305_v49  ;;  %v595_v51 = vpop.f32.mrb[3].mxu0 }
 0x2c0   :  { %v309_v52 = vmul.f32 0.2, %v306_v50 }
 0x2c2   :  { %v310_v53 = vmax.f32 %v306_v50, %v309_v52 }
 0x2c4   :  { %629 = vmatmul.mubr.f32.vlgmr.msra.gmra.mrb[2].mxu1 %v310_v53 }
 0x397   :  { %v399_v0 = vpop.f32.mrb[2].mxu1 }
 0x398   :  { %v400_v55 = vadd.f32 %v422_v54, %v399_v0  ;;  %v630_v56 = vpop.f32.mrb[3].mxu1 }
 0x39a   :  { %403 = vst [vmem:[#allocation5] sm:$0xff] %v400_v55 }
 0x39b   :  { %767 = shalt.err (!%p764_p12)
}
 0x39c   :  { %s768_s12 = scalar_lea.hbm %s891_s3, 128 }
 0x39d   :  { %p769_p13 = scmp.ne.s32.totalorder %s891_s3, %s768_s12  ;;  %p772_p0 = scmp.lt.u32.totalorder %s768_s12, %s891_s3 }
 0x39f   :  { %p774_p1 = pnand %p772_p0, %p769_p13 }
 0x3a1   :  { %777 = shalt.err (!%p774_p1)
}
 0x3a2   :  { %413 = dma.vmem_to_hbm [thread:$0]  %s411_s8, 128, %s891_s3, [#allocation4]  }
 0x3a3   :  { %780 = dma.done.wait [#allocation4], 128  }
 0x3a4   :  { %781 = vsyncadd [#allocation4], 4294967168 }
 0x3a5   :  { %417 = vsyncpa [#allocation3], 1 }
 0x3a6   :  { %418 = vsyncpa [#allocation4], 1 }

</bundles_post_ra>
